<compile_context>
chip_gen: v7x
topology: tpu7x:2x2x1
jax: 0.10.0
libtpu: 0.0.40
codegen_flags: <defaults>
</compile_context>

<pallas_src>
import jax
import jax.numpy as jnp
from jax.experimental import pallas as pl
from jax.experimental.pallas import tpu as pltpu


def _make_pe(d_model: int, max_seq_length: int) -> jnp.ndarray:
    """Deterministic positional-encoding buffer, identical to the PyTorch __init__."""
    assert d_model % 2 == 0, "PositionalEncoding requires an even d_model"
    position = jnp.arange(0, max_seq_length, dtype=jnp.float32)[:, None]          # (L, 1)
    div_term = jnp.power(
        10000.0, -jnp.arange(0, d_model, 2, dtype=jnp.float32) / d_model
    )                                                                              # (D/2,)
    angles = position * div_term                                                   # (L, D/2)
    pe = jnp.zeros((max_seq_length, d_model), dtype=jnp.float32)
    pe = pe.at[:, 0::2].set(jnp.sin(angles))
    pe = pe.at[:, 1::2].set(jnp.cos(angles))
    return pe[None, :, :]                                                          # (1, L, D)


def _pe_add_kernel(x_ref, pe_ref, o_ref):
    # x_ref / o_ref: (TB, TR, LANE); pe_ref: (1, TR, LANE) broadcast over the batch
    # rows of the block. Pure VPU elementwise add.
    o_ref[...] = (x_ref[...] + pe_ref[...]).astype(o_ref.dtype)


def _sublane_multiple(dtype) -> int:
    # 32-bit dtypes pack 8 rows per vreg; bf16 -> 16; int8/fp8 -> 32.
    return max(8, 32 // jnp.dtype(dtype).itemsize)


def _vmem_limit_bytes() -> int:
    """Generation-aware scoped-VMEM limit: <=32 MiB on v7x (64 MiB physical),
    up to 64 MiB on v5e/v6e (128 MiB physical)."""
    limit = 32 * 1024 * 1024
    try:
        cap = getattr(pltpu.get_tpu_info(), "vmem_capacity_bytes", None)
        if cap:
            limit = min(64 * 1024 * 1024, max(32 * 1024 * 1024, int(cap) // 2))
    except Exception:
        pass
    return limit


_ROW_TILE_BYTES = 2 * 1024 * 1024   # cap for one batch-row slab of a tile (= pe tile)
_BLOCK_BYTES = 4 * 1024 * 1024      # cap for a whole (TB, TR, LANE) x/out tile


def _pe_add_call(x_in: jnp.ndarray, pe_in: jnp.ndarray, lane: int) -> jnp.ndarray:
    """x_in: (B, n_rows, lane); pe_in: (1, >= n_rows, lane). Returns x_in + pe_in[:, :n_rows]."""
    B, n_rows, _ = x_in.shape
    itemsize = jnp.dtype(x_in.dtype).itemsize
    mult = _sublane_multiple(x_in.dtype)
    row_bytes = lane * itemsize

    if n_rows < mult:
        # Tiny input: single full-height block. Cut pe to the same height so both
        # blocks take the "equals the full array dim" branch of the (8,128) rule.
        # At this size the extra pe slice is a few hundred bytes - negligible.
        tr = n_rows
        if pe_in.shape[1] != n_rows:
            pe_in = pe_in[:, :n_rows, :]
    else:
        # Fixed, sublane-aligned row tile <= ~2 MiB; ragged last block handled by
        # Pallas (safe for elementwise add), no divisor search / full-plane fallback.
        max_tr = max(mult, (_ROW_TILE_BYTES // row_bytes) // mult * mult)
        tr = min(max_tr, (n_rows // mult) * mult)

    block_row_bytes = tr * row_bytes
    # Pack batch elements until the x/out block reaches ~4 MiB.
    tb = max(1, min(B, _BLOCK_BYTES // max(block_row_bytes, 1)))

    # Seq-tile axis outermost (megacore split keeps per-core pe reuse), batch
    # innermost so pe's block index is constant and its DMA is skipped across b.
    grid = (pl.cdiv(n_rows, tr), pl.cdiv(B, tb))

    return pl.pallas_call(
        _pe_add_kernel,
        out_shape=jax.ShapeDtypeStruct(x_in.shape, x_in.dtype),
        grid_spec=pltpu.PrefetchScalarGridSpec(
            num_scalar_prefetch=0,
            grid=grid,
            in_specs=[
                pl.BlockSpec((tb, tr, lane), lambda s, b: (b, s, 0)),   # x tile
                pl.BlockSpec((1, tr, lane), lambda s, b: (0, s, 0)),    # pe tile (reused over b)
            ],
            out_specs=pl.BlockSpec((tb, tr, lane), lambda s, b: (b, s, 0)),
        ),
        compiler_params=pltpu.CompilerParams(
            dimension_semantics=("parallel", "parallel"),
            vmem_limit_bytes=_vmem_limit_bytes(),
        ),
    )(x_in, pe_in)


class PositionalEncoding:
    """JAX/Pallas port of the PyTorch PositionalEncoding module."""

    def __init__(self, d_model: int, max_seq_length: int, dtype=jnp.float32):
        assert d_model % 2 == 0, "PositionalEncoding requires an even d_model"
        self.d_model = d_model
        self.max_seq_length = max_seq_length
        self.dtype = jnp.dtype(dtype)

        # f32 reference buffer, identical to the torch registered buffer.
        self.pe = _make_pe(d_model, max_seq_length)                     # (1, L, D) f32

        # One-time prep: cast to model dtype and pre-fold to a lane-dense layout so
        # the forward never re-slices / re-casts pe through HBM.
        pe_t = self.pe.astype(self.dtype)
        self._pe_full = pe_t                                            # (1, L, D) fallback layout
        flat = max_seq_length * d_model
        pad = (-flat) % 128
        pe_flat = pe_t.reshape(1, flat)
        if pad:
            pe_flat = jnp.pad(pe_flat, ((0, 0), (0, pad)))
        self._pe_folded = pe_flat.reshape(1, -1, 128)                   # (1, ceil(L*D/128), 128)

    def __call__(self, x: jnp.ndarray) -> jnp.ndarray:
        B, S, D = x.shape
        assert D == self.d_model, f"expected d_model={self.d_model}, got {D}"
        assert S <= self.max_seq_length, f"seq_len {S} exceeds max_seq_length {self.max_seq_length}"

        if (S * D) % 128 == 0:
            # Lane-dense path: fold (S, D) into (rows, 128); the first S*D/128 rows
            # of the pre-folded pe buffer are exactly pe[:, :S] in the same layout.
            n_rows = (S * D) // 128
            x_in = x.reshape(B, n_rows, 128)
            out = _pe_add_call(x_in, self._pe_folded, lane=128)
            return out.reshape(B, S, D)

        # Rare fallback: keep (B, S, D) with full-D lane (masked stores if D < 128).
        # TODO(synk): pad D up to a lane-dense width if this path ever matters on v5e.
        return _pe_add_call(x, self._pe_full, lane=D)


if __name__ == "__main__":
    d_model = 32
    max_seq_length = 16
    batch = 2
    seq_len = 8  # <= max_seq_length, exercises the pe[:, :x.size(1)] slice

    module = PositionalEncoding(d_model, max_seq_length, dtype=jnp.float32)

    key = jax.random.PRNGKey(0)
    x = jax.random.normal(key, (batch, seq_len, d_model), dtype=jnp.float32)

    out = jax.block_until_ready(module(x))

    # correctness check against pure-JAX reference
    ref = x + module.pe[:, :seq_len]
    assert out.shape == (batch, seq_len, d_model)
    assert jnp.allclose(out, ref, atol=1e-6, rtol=1e-6)

    print("KERNEL_OK")
</pallas_src>

<mosaic_0001>
module attributes {stable_mosaic.version = 11 : i64} {
  func.func @_pe_add_kernel(%arg0: i32, %arg1: i32, %arg2: memref<2x2x128xf32, #tpu.memory_space<vmem>>, %arg3: memref<1x2x128xf32, #tpu.memory_space<vmem>>, %arg4: memref<2x2x128xf32, #tpu.memory_space<vmem>>) attributes {dimension_semantics = [#tpu.dimension_semantics<parallel>, #tpu.dimension_semantics<parallel>], iteration_bounds = array<i64: 1, 1>, scalar_prefetch = 0 : i64, scratch_operands = 0 : i64, tpu.core_type = #tpu.core_type<tc>, window_params = [{transform_indices = @transform_0, window_bounds = array<i64: 2, 2, 128>}, {transform_indices = @transform_1, window_bounds = array<i64: 1, 2, 128>}, {transform_indices = @transform_2, window_bounds = array<i64: 2, 2, 128>}]} {
    %c0 = arith.constant 0 : index
    %c0_0 = arith.constant 0 : index
    %c0_1 = arith.constant 0 : index
    %0 = vector.load %arg2[%c0, %c0_0, %c0_1] : memref<2x2x128xf32, #tpu.memory_space<vmem>>, vector<2x2x128xf32>
    %c0_2 = arith.constant 0 : index
    %c0_3 = arith.constant 0 : index
    %c0_4 = arith.constant 0 : index
    %1 = vector.load %arg3[%c0_2, %c0_3, %c0_4] : memref<1x2x128xf32, #tpu.memory_space<vmem>>, vector<1x2x128xf32>
    %2 = vector.broadcast %1 : vector<1x2x128xf32> to vector<2x2x128xf32>
    %3 = arith.addf %0, %2 : vector<2x2x128xf32>
    %c0_5 = arith.constant 0 : index
    %c0_6 = arith.constant 0 : index
    %c0_7 = arith.constant 0 : index
    %4 = vector.load %arg4[%c0_5, %c0_6, %c0_7] : memref<2x2x128xf32, #tpu.memory_space<vmem>>, vector<2x2x128xf32>
    tpu.vector_store %arg4[%c0_5, %c0_6, %c0_7], %3 {strides = array<i32>} : memref<2x2x128xf32, #tpu.memory_space<vmem>>, vector<2x2x128xf32>,
    return
  }
  func.func @transform_0(%arg0: i32, %arg1: i32) -> (i32, i32, i32) {
    %c0_i32 = arith.constant 0 : i32
    %c0_i32_0 = arith.constant 0 : i32
    return %arg1, %arg0, %c0_i32 : i32, i32, i32
  }
  func.func @transform_1(%arg0: i32, %arg1: i32) -> (i32, i32, i32) {
    %c0_i32 = arith.constant 0 : i32
    %c0_i32_0 = arith.constant 0 : i32
    %c0_i32_1 = arith.constant 0 : i32
    return %c0_i32, %arg0, %c0_i32_0 : i32, i32, i32
  }
  func.func @transform_2(%arg0: i32, %arg1: i32) -> (i32, i32, i32) {
    %c0_i32 = arith.constant 0 : i32
    %c0_i32_0 = arith.constant 0 : i32
    return %arg1, %arg0, %c0_i32 : i32, i32, i32
  }
}

</mosaic_0001>

<bundles_post_ra>
// kernel: tpu_custom_call.1
= control target key start
LH: loop header
LB: loop body
LE: loop exit
PB: predicated region body
PF: predicated region fallthrough
CT: control target
= control target key end

     0   :  { %7 = vsyncpa [#allocation3], 0  ;;  %s154_s0 = inlined_call_operand.hbm [shape: f32[2,2,128], index: 0, kind: input, shape index: {}]   ;;  %s155_s1 = inlined_call_operand.vmem [shape: f32[1,2,128], index: 1, kind: input, shape index: {}]   ;;  %s156_s2 = inlined_call_operand.hbm [shape: f32[2,2,128], index: 2, kind: output, shape index: {}]  }
   0x1   :  { %8 = vsyncpa [#allocation4], 0  ;;  %s102_s9 = smov [#allocation2]   ;;  %s54_s13 = scalar_lea.hbm %s154_s0, 64 }
   0x2   :  { %s14_s10 = sshll.u32 %s102_s9, 4  ;;  %p55_p0 = scmp.ne.s32.totalorder %s154_s0, %s54_s13  ;;  %s15_s10 = int_to_ptr.vmem [resolvable:$true] %s14_s10 }
   0x3   :  { %p58_p1 = scmp.lt.u32.totalorder %s54_s13, %s154_s0 }
   0x5   :  { %p60_p2 = pnand %p58_p1, %p55_p0 }
   0x7   :  { %63 = shalt.err (!%p60_p2)
}
   0x8   :  { %s64_s18 = scalar_lea.vmem %s15_s10, 64  ;;  %p69_p4 = scmp.lt.s32.totalorder %s15_s10, %s15_s10 }
   0x9   :  { %p65_p3 = scmp.ne.s32.totalorder %s15_s10, %s64_s18  ;;  %p70_p5 = scmp.lt.s32.totalorder %s64_s18, %s64_s18 }
   0xb   :  { %p71_p6 = por %p70_p5, %p69_p4 }
   0xd   :  { %p72_p7 = pnand %p71_p6, %p65_p3 }
   0xf   :  { %75 = shalt.err (!%p72_p7)
}
  0x10   :  { %s103_s19 = smov 32   ;;  %s104_s20 = smov 2  }
  0x11   :  { %20 = dma.hbm_to_vmem [thread:$0]  %s154_s0, 64, %s15_s10, [#allocation3], %s103_s19, %s103_s19, %s104_s20  }
  0x12   :  { %98 = dma.done.wait [#allocation3], 64  }
  0x13   :  { %99 = vsyncadd [#allocation3], 4294967232  ;;  %s105_s23 = smov [#allocation5]   ;;  %v26_v0 = vld [vmem:[#allocation2] sm:$0x3] }
  0x14   :  { %s38_s24 = sshll.u32 %s105_s23, 4  ;;  %v28_v1 = vld [vmem:[%s155_s1] sm:$0x3]  ;;  %v27_v2 = vld [vmem:[#allocation2 + $0x2] sm:$0x3]  ;;  %s39_s24 = int_to_ptr.vmem [resolvable:$true] %s38_s24 }
  0x15   :  { %v29_v3 = vadd.f32 %v28_v1, %v26_v0  ;;  %v30_v4 = vadd.f32 %v28_v1, %v27_v2  ;;  %s76_s27 = scalar_lea.vmem %s39_s24, 64  ;;  %p81_p9 = scmp.lt.s32.totalorder %s39_s24, %s39_s24 }
  0x16   :  { %p77_p8 = scmp.ne.s32.totalorder %s39_s24, %s76_s27  ;;  %p82_p10 = scmp.lt.s32.totalorder %s76_s27, %s76_s27 }
  0x17   :  { %31 = vst [vmem:[#allocation5] sm:$0x3] %v29_v3  ;;  %32 = vst [vmem:[#allocation5 + $0x2] sm:$0x3] %v30_v4 }
  0x18   :  { %p83_p11 = por %p82_p10, %p81_p9 }
  0x1a   :  { %p84_p12 = pnand %p83_p11, %p77_p8 }
  0x1c   :  { %87 = shalt.err (!%p84_p12)
}
  0x1d   :  { %s88_s29 = scalar_lea.hbm %s156_s2, 64 }
  0x1e   :  { %p89_p13 = scmp.ne.s32.totalorder %s156_s2, %s88_s29  ;;  %p92_p0 = scmp.lt.u32.totalorder %s88_s29, %s156_s2 }
  0x20   :  { %p94_p1 = pnand %p92_p0, %p89_p13 }
  0x22   :  { %97 = shalt.err (!%p94_p1)
}
  0x23   :  { %44 = dma.vmem_to_hbm [thread:$0]  %s39_s24, 64, %s156_s2, [#allocation4], %s103_s19, %s103_s19, %s104_s20  }
  0x24   :  { %100 = dma.done.wait [#allocation4], 64  }
  0x25   :  { %101 = vsyncadd [#allocation4], 4294967232 }
  0x26   :  { %48 = vsyncpa [#allocation3], 1 }
  0x27   :  { %49 = vsyncpa [#allocation4], 1 }

</bundles_post_ra>
